<compile_context>
chip_gen: v7x
topology: tpu7x:2x2x1
jax: 0.10.0
libtpu: 0.0.40
codegen_flags: <defaults>
</compile_context>

<pallas_src>
import jax
import jax.numpy as jnp
from jax.experimental import pallas as pl
from jax.experimental.pallas import tpu as pltpu


def _softmax_kernel(x_ref, o_ref):
    # x_ref / o_ref: (block_rows, dim) VMEM tiles.  Rows are independent.
    x = x_ref[...].astype(jnp.float32)
    m = jnp.max(x, axis=-1, keepdims=True)
    e = jnp.exp(x - m)
    s = jnp.sum(e, axis=-1, keepdims=True)
    o_ref[...] = (e / s).astype(o_ref.dtype)


def _vmem_capacity_bytes() -> int:
    """Generation-aware VMEM capacity, with a conservative (v7x) fallback."""
    try:
        info = pltpu.get_tpu_info()
        cap = getattr(info, "vmem_capacity_bytes", None)
        if cap:
            return int(cap)
    except Exception:
        pass
    return 64 * 1024 * 1024  # v7x per-TensorCore VMEM (smallest of v5e/v6e/v7x)


def _choose_block_rows(batch: int, dim: int, itemsize: int,
                       vmem_budget_bytes: int) -> int:
    """Pick block_rows so each (block_rows, dim) buffer is ~2 MiB, VMEM-bounded."""
    bytes_per_row = max(dim * itemsize, 1)
    # Auto-pipelining keeps ~4 live buffers (double-buffered input + output).
    max_rows = vmem_budget_bytes // (4 * bytes_per_row)

    if max_rows >= batch:
        # Whole batch fits in one block: a single grid step minimizes per-step
        # overhead on 1-TC parts (v5e/v6e).
        # TODO(synk): on v7x (2 TCs) prefer an even >=4-step split for megacore.
        return batch

    # Target ~2 MiB per block buffer so per-step overhead (~0.35 us) and DMA
    # granularity don't cap us below the HBM roofline.
    target_rows = (2 * 1024 * 1024) // bytes_per_row
    rows = min(max_rows, max(target_rows, 8))
    rows = max(8, (rows // 8) * 8)  # sublane constraint when rows < batch
    # TODO(synk): for extreme dim where even an 8-row block exceeds the VMEM
    # budget, add a second 'arbitrary' grid axis over dim chunks with an
    # online (flash-style) running max/sum.
    return rows


def softmax_pallas(x: jax.Array) -> jax.Array:
    """Softmax along the last axis of a 2-D array, computed in a Pallas TPU kernel."""
    assert x.ndim == 2, "expected (batch, dim)"
    batch, dim = x.shape
    orig_dtype = x.dtype
    itemsize = jnp.dtype(orig_dtype).itemsize

    vmem_cap = _vmem_capacity_bytes()
    vmem_budget = int(vmem_cap * 0.6)             # headroom for compiler scratch
    vmem_limit = min(int(vmem_cap * 0.75), 96 * 1024 * 1024)

    block_rows = _choose_block_rows(batch, dim, itemsize, vmem_budget)
    grid = (pl.cdiv(batch, block_rows),)

    out = pl.pallas_call(
        _softmax_kernel,
        out_shape=jax.ShapeDtypeStruct((batch, dim), orig_dtype),
        grid_spec=pltpu.PrefetchScalarGridSpec(
            num_scalar_prefetch=0,
            grid=grid,
            # Last block dim == full array dim: always legal, no lane padding
            # or slice-back needed in the wrapper.
            in_specs=[pl.BlockSpec((block_rows, dim), lambda i: (i, 0))],
            out_specs=pl.BlockSpec((block_rows, dim), lambda i: (i, 0)),
        ),
        compiler_params=pltpu.CompilerParams(
            dimension_semantics=("parallel",),
            vmem_limit_bytes=vmem_limit,
        ),
        cost_estimate=pl.CostEstimate(
            flops=5 * batch * dim,
            transcendentals=batch * dim,
            bytes_accessed=2 * batch * dim * itemsize,
        ),
    )(x)
    return out


if __name__ == "__main__":
    key = jax.random.PRNGKey(0)

    # Case 1: narrow rows (dim < 128) — no padding, full-dim block.
    batch, dim = 16, 32
    x = jax.random.normal(key, (batch, dim), dtype=jnp.float32)
    out = softmax_pallas(x)
    jax.block_until_ready(out)
    ref = jax.nn.softmax(x, axis=-1)
    assert out.shape == x.shape and out.dtype == x.dtype
    assert jnp.allclose(out, ref, atol=1e-5, rtol=1e-5)
    assert jnp.allclose(jnp.sum(out, axis=-1), 1.0, atol=1e-4)

    # Case 2: lane-dense dim (multiple of 128).
    k2 = jax.random.PRNGKey(1)
    batch2, dim2 = 16, 256
    x2 = jax.random.normal(k2, (batch2, dim2), dtype=jnp.float32)
    out2 = softmax_pallas(x2)
    jax.block_until_ready(out2)
    ref2 = jax.nn.softmax(x2, axis=-1)
    assert jnp.allclose(out2, ref2, atol=1e-5, rtol=1e-5)
    assert jnp.allclose(jnp.sum(out2, axis=-1), 1.0, atol=1e-4)

    # Case 3: awkward shape — batch not a multiple of 8, dim not a multiple of 128.
    k3 = jax.random.PRNGKey(2)
    batch3, dim3 = 10, 200
    x3 = jax.random.normal(k3, (batch3, dim3), dtype=jnp.float32)
    out3 = softmax_pallas(x3)
    jax.block_until_ready(out3)
    ref3 = jax.nn.softmax(x3, axis=-1)
    assert jnp.allclose(out3, ref3, atol=1e-5, rtol=1e-5)
    assert jnp.allclose(jnp.sum(out3, axis=-1), 1.0, atol=1e-4)

    print("KERNEL_OK")
</pallas_src>

<mosaic_0001>
module attributes {stable_mosaic.version = 11 : i64} {
  func.func @_softmax_kernel(%arg0: i32, %arg1: memref<16x32xf32, #tpu.memory_space<vmem>>, %arg2: memref<16x32xf32, #tpu.memory_space<vmem>>) attributes {dimension_semantics = [#tpu.dimension_semantics<parallel>], iteration_bounds = array<i64: 1>, scalar_prefetch = 0 : i64, scratch_operands = 0 : i64, tpu.core_type = #tpu.core_type<tc>, window_params = [{transform_indices = @transform_0, window_bounds = array<i64: 16, 32>}, {transform_indices = @transform_1, window_bounds = array<i64: 16, 32>}]} {
    %c0 = arith.constant 0 : index
    %c0_0 = arith.constant 0 : index
    %0 = vector.load %arg1[%c0, %c0_0] : memref<16x32xf32, #tpu.memory_space<vmem>>, vector<16x32xf32>
    %cst = arith.constant dense<0xFF800000> : vector<16xf32>
    %1 = vector.multi_reduction <maximumf>, %0, %cst [1] : vector<16x32xf32> to vector<16xf32>
    %2 = vector.shape_cast %1 : vector<16xf32> to vector<16x1xf32>
    %3 = vector.broadcast %2 : vector<16x1xf32> to vector<16x32xf32>
    %4 = arith.subf %0, %3 : vector<16x32xf32>
    %5 = math.exp %4 : vector<16x32xf32>
    %cst_1 = arith.constant dense<0.000000e+00> : vector<16xf32>
    %6 = vector.multi_reduction <add>, %5, %cst_1 [1] : vector<16x32xf32> to vector<16xf32>
    %7 = vector.shape_cast %6 : vector<16xf32> to vector<16x1xf32>
    %8 = vector.broadcast %7 : vector<16x1xf32> to vector<16x32xf32>
    %9 = arith.divf %5, %8 : vector<16x32xf32>
    %c0_2 = arith.constant 0 : index
    %c0_3 = arith.constant 0 : index
    %10 = vector.load %arg2[%c0_2, %c0_3] : memref<16x32xf32, #tpu.memory_space<vmem>>, vector<16x32xf32>
    tpu.vector_store %arg2[%c0_2, %c0_3], %9 {strides = array<i32>} : memref<16x32xf32, #tpu.memory_space<vmem>>, vector<16x32xf32>,
    return
  }
  func.func @transform_0(%arg0: i32) -> (i32, i32) {
    %c0_i32 = arith.constant 0 : i32
    %c0_i32_0 = arith.constant 0 : i32
    return %arg0, %c0_i32 : i32, i32
  }
  func.func @transform_1(%arg0: i32) -> (i32, i32) {
    %c0_i32 = arith.constant 0 : i32
    %c0_i32_0 = arith.constant 0 : i32
    return %arg0, %c0_i32 : i32, i32
  }
}

</mosaic_0001>

<bundles_post_ra>
// kernel: tpu_custom_call.1
= control target key start
LH: loop header
LB: loop body
LE: loop exit
PB: predicated region body
PF: predicated region fallthrough
CT: control target
= control target key end

     0   :  { %6 = vsyncpa [#allocation3], 0  ;;  %s177_s0 = inlined_call_operand.hbm [shape: f32[16,32], index: 0, kind: input, shape index: {}]   ;;  %s178_s1 = inlined_call_operand.hbm [shape: f32[16,32], index: 1, kind: output, shape index: {}]  }
   0x1   :  { %7 = vsyncpa [#allocation4], 0  ;;  %s127_s6 = smov [#allocation2]   ;;  %s79_s10 = scalar_lea.hbm %s177_s0, 256 }
   0x2   :  { %s13_s7 = sshll.u32 %s127_s6, 4  ;;  %p80_p0 = scmp.ne.s32.totalorder %s177_s0, %s79_s10  ;;  %s14_s7 = int_to_ptr.vmem [resolvable:$true] %s13_s7 }
   0x3   :  { %p83_p1 = scmp.lt.u32.totalorder %s79_s10, %s177_s0 }
   0x5   :  { %p85_p2 = pnand %p83_p1, %p80_p0 }
   0x7   :  { %88 = shalt.err (!%p85_p2)
}
   0x8   :  { %s89_s15 = scalar_lea.vmem %s14_s7, 256  ;;  %p94_p4 = scmp.lt.s32.totalorder %s14_s7, %s14_s7 }
   0x9   :  { %p90_p3 = scmp.ne.s32.totalorder %s14_s7, %s89_s15  ;;  %p95_p5 = scmp.lt.s32.totalorder %s89_s15, %s89_s15 }
   0xb   :  { %p96_p6 = por %p95_p5, %p94_p4 }
   0xd   :  { %p97_p7 = pnand %p96_p6, %p90_p3 }
   0xf   :  { %100 = shalt.err (!%p97_p7)
}
  0x10   :  { %s128_s16 = smov 128   ;;  %s129_s17 = smov 8  }
  0x11   :  { %19 = dma.hbm_to_vmem [thread:$0]  %s177_s0, 256, %s14_s7, [#allocation3], %s128_s16, %s128_s16, %s129_s17  }
  0x12   :  { %123 = dma.done.wait [#allocation3], 256  }
  0x13   :  { %124 = vsyncadd [#allocation3], 4294967040  ;;  %vm25_vm0 = vcmask 261120   ;;  %v23_v0 = vld [vmem:[#allocation2] sm:$0xff]  ;;  %v24_v1 = vld [vmem:[#allocation2 + $0x8] sm:$0xff]  ;;  %s130_s0 = smov [#allocation5]  }
  0x14   :  { %v26_v2 = vsel %vm25_vm0, %v23_v0, -inf  ;;  %v29_v3 = vsel %vm25_vm0, %v24_v1, -inf  ;;  %s55_s20 = sshll.u32 %s130_s0, 4  ;;  %s56_s20 = int_to_ptr.vmem [resolvable:$true] %s55_s20 }
  0x15   :  { %27 = vmax.xlane.f32.xlu0 %v26_v2  ;;  %s101_s21 = scalar_lea.vmem %s56_s20, 256  ;;  %p106_p9 = scmp.lt.s32.totalorder %s56_s20, %s56_s20 }
  0x16   :  { %p102_p8 = scmp.ne.s32.totalorder %s56_s20, %s101_s21  ;;  %p107_p10 = scmp.lt.s32.totalorder %s101_s21, %s101_s21 }
  0x18   :  { %p108_p11 = por %p107_p10, %p106_p9 }
  0x19   :  { %30 = vmax.xlane.f32.xlu0 %v29_v3 }
  0x1a   :  { %p109_p12 = pnand %p108_p11, %p102_p8 }
  0xa2   :  { %v28_v4 = vpop.xlane.xlu0 %27 }
  0xa3   :  { %v32_v5 = vsub.f32 %v23_v0, %v28_v4 }
  0xa5   :  { %v34_v6 = vmul.f32 1.442695, %v32_v5 }
  0xa6   :  { %v31_v7 = vpop.xlane.xlu0 %30 }
  0xa7   :  { %71 = vpow2.f32 %v34_v6  ;;  %v33_v8 = vsub.f32 %v24_v1, %v31_v7 }
  0xa9   :  { %v36_v9 = vmul.f32 1.442695, %v33_v8 }
  0xab   :  { %73 = vpow2.f32 %v36_v9 }
  0xb1   :  { %v72_v10 = vpop.eup %71 }
  0xb2   :  { %v38_v11 = vsel %vm25_vm0, %v72_v10, 0.0 }
  0xb3   :  { %39 = vadd.xlane.f32.xlu1 %v38_v11 }
  0xb5   :  { %v74_v12 = vpop.eup %73 }
  0xb6   :  { %v41_v13 = vsel %vm25_vm0, %v74_v12, 0.0 }
  0xb7   :  { %42 = vadd.xlane.f32.xlu1 %v41_v13 }
 0x140   :  { %v40_v14 = vpop.xlane.xlu1 %39 }
 0x141   :  { %75 = vrcp.f32 %v40_v14 }
 0x144   :  { %v43_v15 = vpop.xlane.xlu1 %42 }
 0x145   :  { %77 = vrcp.f32 %v43_v15 }
 0x14b   :  { %v76_v16 = vpop.eup %75 }
 0x14c   :  { %v45_v17 = vmul.f32 %v76_v16, %v72_v10 }
 0x14e   :  { %48 = vst.msk [vmem:[#allocation5] sm:$0xff] %vm25_vm0, %v45_v17 }
 0x14f   :  { %v78_v18 = vpop.eup %77 }
 0x150   :  { %v47_v19 = vmul.f32 %v78_v18, %v74_v12 }
 0x152   :  { %49 = vst.msk [vmem:[#allocation5 + $0x8] sm:$0xff] %vm25_vm0, %v47_v19 }
 0x153   :  { %112 = shalt.err (!%p109_p12)
}
 0x154   :  { %s113_s24 = scalar_lea.hbm %s178_s1, 256 }
 0x155   :  { %p114_p13 = scmp.ne.s32.totalorder %s178_s1, %s113_s24  ;;  %p117_p0 = scmp.lt.u32.totalorder %s113_s24, %s178_s1 }
 0x157   :  { %p119_p1 = pnand %p117_p0, %p114_p13 }
 0x159   :  { %122 = shalt.err (!%p119_p1)
}
 0x15a   :  { %61 = dma.vmem_to_hbm [thread:$0]  %s56_s20, 256, %s178_s1, [#allocation4], %s128_s16, %s128_s16, %s129_s17  }
 0x15b   :  { %125 = dma.done.wait [#allocation4], 256  }
 0x15c   :  { %126 = vsyncadd [#allocation4], 4294967040 }
 0x15d   :  { %65 = vsyncpa [#allocation3], 1 }
 0x15e   :  { %66 = vsyncpa [#allocation4], 1 }

</bundles_post_ra>
